<compile_context>
chip_gen: v7x
topology: tpu7x:2x2x1
jax: 0.10.0
libtpu: 0.0.40
codegen_flags: <defaults>
</compile_context>

<pallas_src>
import jax
import jax.numpy as jnp
from jax.experimental import pallas as pl
from jax.experimental.pallas import tpu as pltpu

_MIB = 1024 * 1024


# ---------------------------------------------------------------------------
# Sizing helpers
# ---------------------------------------------------------------------------
def _cdiv(a, b):
    return -(-a // b)


def _round_up(a, b):
    return _cdiv(a, b) * b


def _vmem_budget_and_cap():
    """Generation-aware VMEM sizing: ~36 MiB usable on v7x (64 MiB/TC),
    ~81 MiB on v5e/v6e (128 MiB/TC)."""
    cap = 64 * _MIB  # conservative default (v7x per-TC VMEM)
    try:
        cap = int(pltpu.get_tpu_info().vmem_capacity_bytes)
    except Exception:
        pass
    budget = max(24 * _MIB, int(cap * 0.7) - 8 * _MIB)
    return budget, cap


def _pick_bb(batch, bytes_per_batch, bufs_per_batch, budget):
    """Largest batches-per-block that fits the VMEM budget; guarantee >= 2 grid
    steps whenever batch >= 2 so the 'parallel' axis shards across v7x's 2 TCs."""
    max_bb = max(1, budget // (bufs_per_batch * bytes_per_batch))
    bb = max(1, min(batch, max_bb))
    if batch >= 2:
        bb = min(bb, _cdiv(batch, 2))
    nblk = _cdiv(batch, bb)
    return bb, nblk


def _vmem_limit(required_bytes, cap):
    # Tied to the chosen block size; never below what the buffers need.
    return int(min(cap - 4 * _MIB, max(32 * _MIB, required_bytes + 8 * _MIB)))


def _pad_axis(x, axis, new_size):
    old = x.shape[axis]
    if new_size == old:
        return x
    pads = [(0, 0)] * x.ndim
    pads[axis] = (0, new_size - old)
    return jnp.pad(x, pads)


def _sublane_partial(sq, sub):
    """(bb, C, HW) -> (sub, HW) partial sum.  The bb axis is plain vector adds;
    the C axis is folded with static 8-aligned sublane-group slices (no retile
    copies) so the final store is a full, unmasked vst."""
    part = jnp.sum(sq, axis=0)                       # (C, HW)
    c = part.shape[0]
    if sub == 1:
        return jnp.sum(part, axis=0, keepdims=True)  # (1, HW)
    acc = part[0:sub]
    for g in range(1, c // sub):
        acc = acc + part[g * sub:(g + 1) * sub]
    return acc                                       # (sub, HW)


# ---------------------------------------------------------------------------
# FeatureSimilarityLoss kernel
# ---------------------------------------------------------------------------
def _make_fsl_kernel(bb, hw_pad, hw_valid, sub):
    inv_hw = 1.0 / float(hw_valid)
    need_mask = hw_pad != hw_valid

    def kernel(fused_ref, f1_ref, f2_ref, w1t_ref, w2t_ref, out_ref):
        w1t = w1t_ref[...]            # (C, mid)  == fc1.weight.T
        w2t = w2t_ref[...]            # (mid, C)  == fc2.weight.T
        fused = fused_ref[...]        # (bb, C, hw_pad)
        x1 = f1_ref[...]
        x2 = f2_ref[...]

        def pool(x):
            # Mean over the true HW (padded lanes are zero, so the sum is exact).
            s = jnp.sum(x, axis=2) * inv_hw                      # (bb, C)
            if need_mask:
                lane = jax.lax.broadcasted_iota(jnp.int32, x.shape, 2)
                x = jnp.where(lane < hw_valid, x, -jnp.inf)
            m = jnp.max(x, axis=2)                               # (bb, C)
            # fc1(avg) + fc1(max) == fc1(avg + max): 1x1 convs, bias-free.
            return s + m

        # Stack both feature maps' pooled vectors -> one fc1/relu/fc2/sigmoid pass.
        pooled = jnp.concatenate([pool(x1), pool(x2)], axis=0)   # (2*bb, C)
        hidden = jnp.maximum(
            jnp.dot(pooled, w1t, preferred_element_type=jnp.float32), 0.0)
        scale = jax.nn.sigmoid(
            jnp.dot(hidden, w2t, preferred_element_type=jnp.float32))  # (2*bb, C)
        s1 = scale[:bb][:, :, None]                               # (bb, C, 1)
        s2 = scale[bb:][:, :, None]

        diff = fused - (s1 * x1 + s2 * x2)                        # (bb, C, hw_pad)
        out_ref[0] = _sublane_partial(diff * diff, sub)           # (sub, hw_pad)

    return kernel


def feature_similarity_loss(fused, f1, f2, w1, w2, weight):
    """fused/f1/f2: (B, C, H, W) f32; w1: (mid, C) = fc1.weight;
    w2: (C, mid) = fc2.weight; weight: (1,) learnable scale."""
    B, C, H, W = fused.shape
    HW = H * W
    mid = w1.shape[0]

    hw_pad = _round_up(HW, 128)
    budget, cap = _vmem_budget_and_cap()
    bytes_per_batch = C * hw_pad * 4
    # 3 inputs x 2 pipeline buffers + ~2 block-sized elementwise temps.
    bb, nblk = _pick_bb(B, bytes_per_batch, 8, budget)
    b_pad = bb * nblk
    vmem_limit = _vmem_limit(8 * bb * bytes_per_batch, cap)
    sub = 8 if C % 8 == 0 else 1

    def prep(x):
        x = _pad_axis(x.reshape(B, C, HW), 2, hw_pad)
        return _pad_axis(x, 0, b_pad)

    fused_r, f1_r, f2_r = prep(fused), prep(f1), prep(f2)
    w1t = jnp.transpose(w1)   # (C, mid)
    w2t = jnp.transpose(w2)   # (mid, C)

    grid_spec = pltpu.PrefetchScalarGridSpec(
        num_scalar_prefetch=0,
        grid=(nblk,),
        in_specs=[
            pl.BlockSpec((bb, C, hw_pad), lambda i: (i, 0, 0)),
            pl.BlockSpec((bb, C, hw_pad), lambda i: (i, 0, 0)),
            pl.BlockSpec((bb, C, hw_pad), lambda i: (i, 0, 0)),
            pl.BlockSpec((C, mid), lambda i: (0, 0)),
            pl.BlockSpec((mid, C), lambda i: (0, 0)),
        ],
        out_specs=pl.BlockSpec((1, sub, hw_pad), lambda i: (i, 0, 0)),
    )

    partials = pl.pallas_call(
        _make_fsl_kernel(bb, hw_pad, HW, sub),
        out_shape=jax.ShapeDtypeStruct((nblk, sub, hw_pad), jnp.float32),
        grid_spec=grid_spec,
        compiler_params=pltpu.CompilerParams(
            dimension_semantics=("parallel",),   # no cross-step state -> dual-TC safe
            vmem_limit_bytes=vmem_limit,
        ),
    )(fused_r, f1_r, f2_r, w1t, w2t)

    total = jnp.sum(partials)
    # mse_loss reduction='mean' over the original elements, scaled by the weight.
    return (weight[0] * total / (B * C * H * W)).astype(jnp.float32)


# ---------------------------------------------------------------------------
# TVLoss kernel
# ---------------------------------------------------------------------------
def _make_tv_kernel(bb, hw_pad, H, W, sub):
    hw_valid = H * W

    def kernel(x_ref, out_ref):
        x = x_ref[...]                                           # (bb, C, hw_pad)
        lane = jax.lax.broadcasted_iota(jnp.int32, x.shape, 2)
        # Horizontal neighbor x[.., j+1]: roll by hw_pad-1 (== jnp.roll(x, -1)).
        x_right = pltpu.roll(x, shift=hw_pad - 1, axis=2)
        mask_w = jnp.logical_and(lane % W != W - 1, lane < hw_valid)
        dw = jnp.where(mask_w, jnp.abs(x_right - x), 0.0)
        # Vertical neighbor x[.., j+W]: roll by hw_pad-W.
        x_down = pltpu.roll(x, shift=hw_pad - W, axis=2)
        mask_h = lane < (H - 1) * W
        dh = jnp.where(mask_h, jnp.abs(x_down - x), 0.0)
        out_ref[0] = _sublane_partial(dw + dh, sub)              # (sub, hw_pad)

    return kernel


def tv_loss(x):
    """x: (B, C, H, W) f32 -> scalar total-variation loss (sum reduction)."""
    B, C, H, W = x.shape
    HW = H * W
    hw_pad = _round_up(HW, 128)

    budget, cap = _vmem_budget_and_cap()
    bytes_per_batch = C * hw_pad * 4
    # 1 input x 2 pipeline buffers + rolled / iota / abs temps.
    bb, nblk = _pick_bb(B, bytes_per_batch, 6, budget)
    b_pad = bb * nblk
    vmem_limit = _vmem_limit(6 * bb * bytes_per_batch, cap)
    sub = 8 if C % 8 == 0 else 1

    x_r = _pad_axis(_pad_axis(x.reshape(B, C, HW), 2, hw_pad), 0, b_pad)

    partials = pl.pallas_call(
        _make_tv_kernel(bb, hw_pad, H, W, sub),
        out_shape=jax.ShapeDtypeStruct((nblk, sub, hw_pad), jnp.float32),
        grid_spec=pltpu.PrefetchScalarGridSpec(
            num_scalar_prefetch=0,
            grid=(nblk,),
            in_specs=[pl.BlockSpec((bb, C, hw_pad), lambda i: (i, 0, 0))],
            out_specs=pl.BlockSpec((1, sub, hw_pad), lambda i: (i, 0, 0)),
        ),
        compiler_params=pltpu.CompilerParams(
            dimension_semantics=("parallel",),
            vmem_limit_bytes=vmem_limit,
        ),
    )(x_r)

    return jnp.sum(partials)


# ---------------------------------------------------------------------------
# CompositeLoss (partial — Pallas-translatable terms only)
# ---------------------------------------------------------------------------
def composite_loss(output, target, features_output, features1, features2,
                   w1, w2, fsl_weight, alpha1=1.0, alpha2=1.0, beta=1.0):
    del target, alpha1, alpha2  # used only by the omitted terms below
    l_feat = feature_similarity_loss(features_output, features1, features2,
                                     w1, w2, fsl_weight)
    l_tv = tv_loss(output)
    # TODO(synk): L_det (MS-SSIM) and L_perceptual (pretrained VGG19) require an
    # external library / pretrained weights and are not implemented here.
    return l_feat + beta * l_tv


# ---------------------------------------------------------------------------
# Pure-JAX references
# ---------------------------------------------------------------------------
def _fsl_reference(fused, f1, f2, w1, w2, weight):
    def ca(x):
        avg = jnp.mean(x, axis=(2, 3), keepdims=True)      # (B,C,1,1)
        mx = jnp.max(x, axis=(2, 3), keepdims=True)        # (B,C,1,1)
        def fc1(v):
            return jnp.einsum('mc,bcij->bmij', w1, v)
        out = jax.nn.relu(fc1(avg) + fc1(mx))
        out = jnp.einsum('cm,bmij->bcij', w2, out)
        return jax.nn.sigmoid(out) * x
    e1 = ca(f1)
    e2 = ca(f2)
    return weight[0] * jnp.mean((fused - (e1 + e2)) ** 2)


def _tv_reference(x):
    return (jnp.sum(jnp.abs(x[:, :, 1:, :] - x[:, :, :-1, :])) +
            jnp.sum(jnp.abs(x[:, :, :, 1:] - x[:, :, :, :-1])))


if __name__ == "__main__":
    B, C, H, W = 2, 32, 16, 16
    reduction = 16
    mid = C // reduction  # 2

    key = jax.random.PRNGKey(0)
    k0, k1, k2, k3, k4, k5, k6 = jax.random.split(key, 7)

    fused = jax.random.normal(k0, (B, C, H, W), dtype=jnp.float32)
    feat1 = jax.random.normal(k1, (B, C, H, W), dtype=jnp.float32)
    feat2 = jax.random.normal(k2, (B, C, H, W), dtype=jnp.float32)

    # Conv2d 1x1, bias=False -> plain matrices.
    w1 = 0.1 * jax.random.normal(k3, (mid, C), dtype=jnp.float32)   # fc1 weight
    w2 = 0.1 * jax.random.normal(k4, (C, mid), dtype=jnp.float32)   # fc2 weight
    weight = jnp.ones((1,), dtype=jnp.float32)                      # nn.Parameter(torch.ones(1))

    out_img = jax.random.normal(k5, (B, 3, H, W), dtype=jnp.float32)   # fused RGB output
    tgt_img = jax.random.normal(k6, (B, 3, H, W), dtype=jnp.float32)   # target (unused terms)

    # FeatureSimilarityLoss
    l_feat = feature_similarity_loss(fused, feat1, feat2, w1, w2, weight)
    jax.block_until_ready(l_feat)
    l_feat_ref = _fsl_reference(fused, feat1, feat2, w1, w2, weight)
    assert jnp.allclose(l_feat, l_feat_ref, rtol=1e-5, atol=1e-5), (l_feat, l_feat_ref)

    # TVLoss
    l_tv = tv_loss(out_img)
    jax.block_until_ready(l_tv)
    l_tv_ref = _tv_reference(out_img)
    assert jnp.allclose(l_tv, l_tv_ref, rtol=1e-4, atol=1e-2), (l_tv, l_tv_ref)

    # Partial CompositeLoss (MS-SSIM / perceptual terms omitted — see TODO above).
    l_fuse = composite_loss(out_img, tgt_img, fused, feat1, feat2, w1, w2, weight)
    jax.block_until_ready(l_fuse)

    print("KERNEL_OK")
</pallas_src>

<mosaic_0001>
module attributes {stable_mosaic.version = 11 : i64} {
  func.func @kernel(%arg0: i32, %arg1: memref<1x32x256xf32, #tpu.memory_space<vmem>>, %arg2: memref<1x32x256xf32, #tpu.memory_space<vmem>>, %arg3: memref<1x32x256xf32, #tpu.memory_space<vmem>>, %arg4: memref<32x2xf32, #tpu.memory_space<vmem>>, %arg5: memref<2x32xf32, #tpu.memory_space<vmem>>, %arg6: memref<1x8x256xf32, #tpu.memory_space<vmem>>) attributes {dimension_semantics = [#tpu.dimension_semantics<parallel>], iteration_bounds = array<i64: 2>, scalar_prefetch = 0 : i64, scratch_operands = 0 : i64, tpu.core_type = #tpu.core_type<tc>, window_params = [{transform_indices = @transform_0, window_bounds = array<i64: 1, 32, 256>}, {transform_indices = @transform_1, window_bounds = array<i64: 1, 32, 256>}, {transform_indices = @transform_2, window_bounds = array<i64: 1, 32, 256>}, {pipeline_mode = #tpu.pipeline_mode<synchronous>, transform_indices = @transform_3, window_bounds = array<i64: 32, 2>}, {pipeline_mode = #tpu.pipeline_mode<synchronous>, transform_indices = @transform_4, window_bounds = array<i64: 2, 32>}, {transform_indices = @transform_5, window_bounds = array<i64: 1, 8, 256>}]} {
    %c0 = arith.constant 0 : index
    %c0_0 = arith.constant 0 : index
    %0 = vector.load %arg4[%c0, %c0_0] : memref<32x2xf32, #tpu.memory_space<vmem>>, vector<32x2xf32>
    %c0_1 = arith.constant 0 : index
    %c0_2 = arith.constant 0 : index
    %1 = vector.load %arg5[%c0_1, %c0_2] : memref<2x32xf32, #tpu.memory_space<vmem>>, vector<2x32xf32>
    %c0_3 = arith.constant 0 : index
    %c0_4 = arith.constant 0 : index
    %c0_5 = arith.constant 0 : index
    %2 = vector.load %arg1[%c0_3, %c0_4, %c0_5] : memref<1x32x256xf32, #tpu.memory_space<vmem>>, vector<1x32x256xf32>
    %c0_6 = arith.constant 0 : index
    %c0_7 = arith.constant 0 : index
    %c0_8 = arith.constant 0 : index
    %3 = vector.load %arg2[%c0_6, %c0_7, %c0_8] : memref<1x32x256xf32, #tpu.memory_space<vmem>>, vector<1x32x256xf32>
    %c0_9 = arith.constant 0 : index
    %c0_10 = arith.constant 0 : index
    %c0_11 = arith.constant 0 : index
    %4 = vector.load %arg3[%c0_9, %c0_10, %c0_11] : memref<1x32x256xf32, #tpu.memory_space<vmem>>, vector<1x32x256xf32>
    %cst = arith.constant dense<0.000000e+00> : vector<1x32xf32>
    %5 = vector.multi_reduction <add>, %3, %cst [2] : vector<1x32x256xf32> to vector<1x32xf32>
    %cst_12 = arith.constant 3.906250e-03 : f32
    %6 = vector.broadcast %cst_12 : f32 to vector<1x32xf32>
    %7 = arith.mulf %5, %6 : vector<1x32xf32>
    %cst_13 = arith.constant dense<0xFF800000> : vector<1x32xf32>
    %8 = vector.multi_reduction <maximumf>, %3, %cst_13 [2] : vector<1x32x256xf32> to vector<1x32xf32>
    %9 = arith.addf %7, %8 : vector<1x32xf32>
    %cst_14 = arith.constant dense<0.000000e+00> : vector<1x32xf32>
    %10 = vector.multi_reduction <add>, %4, %cst_14 [2] : vector<1x32x256xf32> to vector<1x32xf32>
    %cst_15 = arith.constant 3.906250e-03 : f32
    %11 = vector.broadcast %cst_15 : f32 to vector<1x32xf32>
    %12 = arith.mulf %10, %11 : vector<1x32xf32>
    %cst_16 = arith.constant dense<0xFF800000> : vector<1x32xf32>
    %13 = vector.multi_reduction <maximumf>, %4, %cst_16 [2] : vector<1x32x256xf32> to vector<1x32xf32>
    %14 = arith.addf %12, %13 : vector<1x32xf32>
    %15 = tpu.concatenate %9, %14 in 0 : vector<1x32xf32>, vector<1x32xf32> -> vector<2x32xf32>
    %cst_17 = arith.constant dense<0.000000e+00> : vector<2x2xf32>
    %16 = tpu.matmul %15, %0, %cst_17 {dimension_numbers = #tpu.dot_dimension_numbers<[1], [0], [0], [1], [0, 0, 1, 1], [], []>} : vector<2x32xf32>, vector<32x2xf32>, vector<2x2xf32> -> vector<2x2xf32>
    %cst_18 = arith.constant 0.000000e+00 : f32
    %17 = vector.broadcast %cst_18 : f32 to vector<2x2xf32>
    %18 = arith.maximumf %16, %17 : vector<2x2xf32>
    %cst_19 = arith.constant dense<0.000000e+00> : vector<2x32xf32>
    %19 = tpu.matmul %18, %1, %cst_19 {dimension_numbers = #tpu.dot_dimension_numbers<[1], [0], [0], [1], [0, 0, 1, 1], [], []>} : vector<2x2xf32>, vector<2x32xf32>, vector<2x32xf32> -> vector<2x32xf32>
    %20 = arith.negf %19 : vector<2x32xf32>
    %21 = math.exp %20 : vector<2x32xf32>
    %cst_20 = arith.constant 1.000000e+00 : f32
    %22 = vector.broadcast %cst_20 : f32 to vector<2x32xf32>
    %23 = arith.addf %22, %21 : vector<2x32xf32>
    %24 = arith.divf %22, %23 : vector<2x32xf32>
    %25 = vector.extract_strided_slice %24 {offsets = [0, 0], sizes = [1, 32], strides = [1, 1]} : vector<2x32xf32> to vector<1x32xf32>
    %26 = vector.shape_cast %25 : vector<1x32xf32> to vector<1x32x1xf32>
    %27 = vector.extract_strided_slice %24 {offsets = [1, 0], sizes = [1, 32], strides = [1, 1]} : vector<2x32xf32> to vector<1x32xf32>
    %28 = vector.shape_cast %27 : vector<1x32xf32> to vector<1x32x1xf32>
    %29 = vector.broadcast %26 : vector<1x32x1xf32> to vector<1x32x256xf32>
    %30 = arith.mulf %29, %3 : vector<1x32x256xf32>
    %31 = vector.broadcast %28 : vector<1x32x1xf32> to vector<1x32x256xf32>
    %32 = arith.mulf %31, %4 : vector<1x32x256xf32>
    %33 = arith.addf %30, %32 : vector<1x32x256xf32>
    %34 = arith.subf %2, %33 : vector<1x32x256xf32>
    %35 = arith.mulf %34, %34 : vector<1x32x256xf32>
    %cst_21 = arith.constant dense<0.000000e+00> : vector<32x256xf32>
    %36 = vector.multi_reduction <add>, %35, %cst_21 [0] : vector<1x32x256xf32> to vector<32x256xf32>
    %37 = vector.extract_strided_slice %36 {offsets = [0, 0], sizes = [8, 256], strides = [1, 1]} : vector<32x256xf32> to vector<8x256xf32>
    %38 = vector.extract_strided_slice %36 {offsets = [8, 0], sizes = [8, 256], strides = [1, 1]} : vector<32x256xf32> to vector<8x256xf32>
    %39 = arith.addf %37, %38 : vector<8x256xf32>
    %40 = vector.extract_strided_slice %36 {offsets = [16, 0], sizes = [8, 256], strides = [1, 1]} : vector<32x256xf32> to vector<8x256xf32>
    %41 = arith.addf %39, %40 : vector<8x256xf32>
    %42 = vector.extract_strided_slice %36 {offsets = [24, 0], sizes = [8, 256], strides = [1, 1]} : vector<32x256xf32> to vector<8x256xf32>
    %43 = arith.addf %41, %42 : vector<8x256xf32>
    %c0_22 = arith.constant 0 : index
    %c0_23 = arith.constant 0 : index
    %c0_24 = arith.constant 0 : index
    %44 = vector.load %arg6[%c0_22, %c0_23, %c0_24] : memref<1x8x256xf32, #tpu.memory_space<vmem>>, vector<1x8x256xf32>
    %45 = vector.shape_cast %44 : vector<1x8x256xf32> to vector<8x256xf32>
    %46 = vector.shape_cast %43 : vector<8x256xf32> to vector<1x8x256xf32>
    tpu.vector_store %arg6[%c0_22, %c0_23, %c0_24], %46 {strides = array<i32>} : memref<1x8x256xf32, #tpu.memory_space<vmem>>, vector<1x8x256xf32>,
    return
  }
  func.func @transform_0(%arg0: i32) -> (i32, i32, i32) {
    %c0_i32 = arith.constant 0 : i32
    %c0_i32_0 = arith.constant 0 : i32
    %c0_i32_1 = arith.constant 0 : i32
    return %arg0, %c0_i32, %c0_i32_0 : i32, i32, i32
  }
  func.func @transform_1(%arg0: i32) -> (i32, i32, i32) {
    %c0_i32 = arith.constant 0 : i32
    %c0_i32_0 = arith.constant 0 : i32
    %c0_i32_1 = arith.constant 0 : i32
    return %arg0, %c0_i32, %c0_i32_0 : i32, i32, i32
  }
  func.func @transform_2(%arg0: i32) -> (i32, i32, i32) {
    %c0_i32 = arith.constant 0 : i32
    %c0_i32_0 = arith.constant 0 : i32
    %c0_i32_1 = arith.constant 0 : i32
    return %arg0, %c0_i32, %c0_i32_0 : i32, i32, i32
  }
  func.func @transform_3(%arg0: i32) -> (i32, i32) {
    %c0_i32 = arith.constant 0 : i32
    %c0_i32_0 = arith.constant 0 : i32
    %c0_i32_1 = arith.constant 0 : i32
    return %c0_i32, %c0_i32_0 : i32, i32
  }
  func.func @transform_4(%arg0: i32) -> (i32, i32) {
    %c0_i32 = arith.constant 0 : i32
    %c0_i32_0 = arith.constant 0 : i32
    %c0_i32_1 = arith.constant 0 : i32
    return %c0_i32, %c0_i32_0 : i32, i32
  }
  func.func @transform_5(%arg0: i32) -> (i32, i32, i32) {
    %c0_i32 = arith.constant 0 : i32
    %c0_i32_0 = arith.constant 0 : i32
    %c0_i32_1 = arith.constant 0 : i32
    return %arg0, %c0_i32, %c0_i32_0 : i32, i32, i32
  }
}

</mosaic_0001>

<bundles_post_ra>
// kernel: tpu_custom_call.1
= control target key start
LH: loop header
LB: loop body
LE: loop exit
PB: predicated region body
PF: predicated region fallthrough
CT: control target
= control target key end

     0   :  { %s1544_s0 = inlined_call_operand.hbm [shape: f32[2,32,256], index: 0, kind: input, shape index: {}]   ;;  %s1545_s1 = inlined_call_operand.hbm [shape: f32[2,32,256], index: 1, kind: input, shape index: {}]   ;;  %s1546_s2 = inlined_call_operand.hbm [shape: f32[2,32,256], index: 2, kind: input, shape index: {}]   ;;  %s1547_s3 = inlined_call_operand.vmem [shape: f32[32,2], index: 3, kind: input, shape index: {}]   ;;  %s1548_s4 = inlined_call_operand.vmem [shape: f32[2,32], index: 4, kind: input, shape index: {}]   ;;  %s1549_s5 = inlined_call_operand.hbm [shape: f32[2,8,256], index: 5, kind: output, shape index: {}]  }
   0x1   :  { %1557 = sst [smem:[#allocation13_spill]] %s1544_s0 }
   0x2   :  { %1558 = sst [smem:[#allocation14_spill]] %s1545_s1 }
   0x3   :  { %10 = vsyncpa [#allocation3], 0 }
   0x4   :  { %12 = vsyncpa [#allocation3 + $0x1], 0 }
   0x5   :  { %13 = vsyncpa [#allocation6], 0 }
   0x6   :  { %15 = vsyncpa [#allocation6 + $0x1], 0 }
   0x7   :  { %16 = vsyncpa [#allocation4], 0 }
   0x8   :  { %18 = vsyncpa [#allocation4 + $0x1], 0  ;;  %s1177_s18 = smov 0   ;;  %s1179_s19 = smov 0  }
   0x9   :  { %s1181_s20 = smov 0   ;;  %s1183_s21 = smov 0  }
   0xa LB: > { %s1198_s22 = sadd.s32 4294967295, %s1136_s21   ;;  %s852_s23 = sadd.s32 4294967294, %s1136_s21   ;;  %s1136_s21 = sphi %s1183_s21, %s1581_s21   ;;  %s1132_s20 = sphi %s1181_s20, %s1580_s20   ;;  %s1128_s19 = sphi %s1179_s19, %s1579_s19   ;;  %s1124_s18 = sphi %s1177_s18, %s1578_s18  }
   0xb   : > { %s1202_s24 = sadd.s32 1, %s1136_s21   ;;  %s31_s25 = sadd.s32 1, %s1132_s20 }
   0xc   : > { %s28_s26 = ssub.s32 %s1136_s21, %s1202_s24  ;;  %p38_p0 = scmp.ne.s32.totalorder %s1132_s20, %s1128_s19 }
   0xd   : > { %p29_p1 = scmp.eq.s32.totalorder %s28_s26, 0  ;;  %p39_p2 = scmp.eq.s32.totalorder %s1136_s21, 0 }
   0xe   : > { %p44_p3 = scmp.ne.s32.totalorder %s1128_s19, %s1124_s18  ;;  %p45_p4 = scmp.eq.s32.totalorder %s1198_s22, 0 }
   0xf   : > { %s1214_s27 = scalar_select %p29_p1, %s1132_s20, %s31_s25  }
  0x10   : > { %p40_p5 = por %p39_p2, %p38_p0  ;;  %p1216_p6 = por %p45_p4, %p44_p3 }
  0x11   : > { %1559 = sst [smem:[#allocation12_spill]] %s1214_s27  ;;  %p162_p7 = scmp.eq.s32.totalorder %s1198_s22, 1 }
  0x12   : > { %s1560_s28 = scalar_select %p1216_p6, 1, 0 }
  0x13   : > { %p168_p8 = scmp.eq.s32.totalorder %s852_s23, 1  ;;  %p933_p10 = scmp.lt.s32.totalorder %s1136_s21, 2 }
  0x14   : > { %p1223_p11 = por %p162_p7, %p38_p0  ;;  %s1552_s6 = sand.u32 1, %s1132_s20  }
  0x15   : > { %p1227_p12 = por %p168_p8, %p44_p3  ;;  %s1233_s7 = sshll.u32 %s1136_s21, 10 }
  0x16   : > { %s1561_s29 = scalar_select %p1223_p11, 1, 0 }
  0x17   : > { %s1562_s30 = scalar_select %p1227_p12, 1, 0 }
  0x18   : > { %s1237_s8 = sshll.u32 %s1552_s6, 6  ;;  %p1239_p13 = pnand %p933_p10, %p40_p5 }
  0x19   : > { %s215_s10 = sand.u32 1, %s1136_s21   ;;  %s1564_s1 = sld [smem:[#allocation14_spill]] }
  0x1a   : > { %s219_s14 = scalar_lea.vmem [#allocation5], %s1237_s8  ;;  %s1254_s16 = scalar_lea.sflag [#allocation6], %s215_s10 }
  0x1b   : > { %s226_s15 = sshll.u32 %s219_s14, 4  ;;  %p1260_p2 = pneg %p1239_p13  ;;  %s1251_s15 = int_to_ptr.vmem [resolvable:$true] %s226_s15 }
  0x1f   : > { %s1248_s13 = scalar_lea.hbm %s1564_s1, %s1233_s7  ;;  %s981_s11 = scalar_lea.hbm %s1564_s1, 2048 }
  0x20   : > { %s976_s17 = scalar_lea.hbm %s1248_s13, 1024  ;;  %p982_p5 = scmp.lt.u32.totalorder %s1248_s13, %s1564_s1 }
  0x21   : > { %p977_p1 = scmp.ne.s32.totalorder %s1248_s13, %s976_s17  ;;  %p983_p7 = scmp.lt.u32.totalorder %s981_s11, %s976_s17 }
  0x22   : > { %p985_p10 = scmp.lt.u32.totalorder %s976_s17, %s1248_s13 }
  0x23   : > { %p979_p3 = pnand %p1260_p2, %p977_p1  ;;  %p984_p8 = por %p983_p7, %p982_p5 }
  0x25   : > { %p980_p4 = pneg %p979_p3  ;;  %p986_p9 = por %p985_p10, %p984_p8 }
  0x27   : > { %p987_p0 = pnand %p986_p9, %p980_p4 }
  0x29   : > { %990 = shalt.err (!%p987_p0)
}
  0x2a   : > { %s991_s10 = scalar_lea.vmem %s1251_s15, 1024  ;;  %s1138_s25 = smov [#allocation5]  }
  0x2b   : > { %p992_p1 = scmp.ne.s32.totalorder %s1251_s15, %s991_s10  ;;  %s996_s26 = sshll.u32 %s1138_s25, 4  ;;  %s997_s26 = int_to_ptr.vmem [resolvable:$false] %s996_s26 }
  0x2c   : > { %s998_s12 = scalar_lea.vmem %s997_s26, 2048  ;;  %p999_p11 = scmp.lt.s32.totalorder %s1251_s15, %s997_s26 }
  0x2d   : > { %p994_p3 = pnand %p992_p1, %p1260_p2  ;;  %p1000_p6 = scmp.lt.s32.totalorder %s998_s12, %s991_s10 }
  0x2f   : > { %p995_p12 = pneg %p994_p3  ;;  %p1001_p5 = por %p1000_p6, %p999_p11 }
  0x31   : > { %p1002_p7 = pnand %p1001_p5, %p995_p12 }
  0x33   : > { %1005 = shalt.err (!%p1002_p7)
}
  0x34   : > { %s1553_s17 = smov 256   ;;  %s1555_s11 = smov 16  }
  0x35   : > { %925 = dma.hbm_to_vmem [thread:$0]  (!%p1239_p13), %s1248_s13, 1024, %s1251_s15, %s1254_s16, %s1553_s17, %s1553_s17, %s1555_s11  }
  0x36   : > { %p255_p6 = scmp.lt.s32.totalorder %s1136_s21, 3  ;;  %s1566_s0 = sld [smem:[#allocation13_spill]] }
  0x37   : > { %p1567_p9 = scmp.ge.s32.totalorder %s1136_s21, 1  ;;  %s198_s12 = scalar_lea.vmem [#allocation2], %s1237_s8 }
  0x38   : > { %s205_s6 = sshll.u32 %s198_s12, 4  ;;  %s1569_s13 = sand.u32 1, %s1132_s20   ;;  %s1301_s6 = int_to_ptr.vmem [resolvable:$true] %s205_s6 }
  0x39   : > { %p1296_p11 = pnand %p1567_p9, %p255_p6  ;;  %s1305_s15 = scalar_lea.sflag [#allocation3], %s1569_s13 }
  0x3b   : > { %s1568_s26 = scalar_select %p1296_p11, 1, 0 }
  0x3c   : > { %s1292_s25 = scalar_lea.hbm %s1566_s0, %s1233_s7  ;;  %s1011_s11 = scalar_lea.hbm %s1566_s0, 2048 }
  0x3d   : > { %s1006_s17 = scalar_lea.hbm %s1292_s25, 1024  ;;  %p1012_p8 = scmp.lt.u32.totalorder %s1292_s25, %s1566_s0 }
  0x3e   : > { %p1007_p12 = scmp.ne.s32.totalorder %s1292_s25, %s1006_s17  ;;  %p1013_p10 = scmp.lt.u32.totalorder %s1011_s11, %s1006_s17 }
  0x3f   : > { %p1015_p3 = scmp.lt.u32.totalorder %s1006_s17, %s1292_s25 }
  0x40   : > { %p1009_p0 = pnand %p1007_p12, %p1260_p2  ;;  %p1014_p1 = por %p1013_p10, %p1012_p8 }
  0x42   : > { %p1010_p4 = pneg %p1009_p0  ;;  %p1016_p5 = por %p1015_p3, %p1014_p1 }
  0x44   : > { %p1017_p7 = pnand %p1016_p5, %p1010_p4 }
  0x46   : > { %1020 = shalt.err (!%p1017_p7)
}
  0x47   : > { %s1021_s12 = scalar_lea.vmem %s1301_s6, 1024  ;;  %s1141_s13 = smov [#allocation2]  }
  0x48   : > { %p1022_p6 = scmp.ne.s32.totalorder %s1301_s6, %s1021_s12  ;;  %s1026_s14 = sshll.u32 %s1141_s13, 4  ;;  %s1027_s14 = int_to_ptr.vmem [resolvable:$false] %s1026_s14 }
  0x49   : > { %s1028_s1 = scalar_lea.vmem %s1027_s14, 2048  ;;  %p1029_p0 = scmp.lt.s32.totalorder %s1301_s6, %s1027_s14 }
  0x4a   : > { %p1024_p9 = pnand %p1022_p6, %p1260_p2  ;;  %p1030_p11 = scmp.lt.s32.totalorder %s1028_s1, %s1021_s12 }
  0x4c   : > { %p1025_p12 = pneg %p1024_p9  ;;  %p1031_p8 = por %p1030_p11, %p1029_p0 }
  0x4e   : > { %p1032_p10 = pnand %p1031_p8, %p1025_p12 }
  0x50   : > { %1035 = shalt.err (!%p1032_p10)
}
  0x51   : > { %s1570_s27 = smov 16   ;;  %s1571_s17 = smov 256  }
  0x52   : > { %922 = dma.hbm_to_vmem [thread:$0]  (!%p1239_p13), %s1292_s25, 1024, %s1301_s6, %s1305_s15, %s1571_s17, %s1571_s17, %s1570_s27  }
  0x53   : > { %s1336_s13 = scalar_lea.hbm %s1546_s2, %s1233_s7  ;;  %s240_s12 = scalar_lea.vmem [#allocation7], %s1237_s8 }
  0x54   : > { %s247_s14 = sshll.u32 %s240_s12, 4  ;;  %s1036_s1 = scalar_lea.hbm %s1336_s13, 1024  ;;  %s1339_s14 = int_to_ptr.vmem [resolvable:$true] %s247_s14 }
  0x55   : > { %p1037_p11 = scmp.ne.s32.totalorder %s1336_s13, %s1036_s1  ;;  %s1041_s25 = scalar_lea.hbm %s1546_s2, 2048 }
  0x56   : > { %p1042_p3 = scmp.lt.u32.totalorder %s1336_s13, %s1546_s2  ;;  %p1043_p5 = scmp.lt.u32.totalorder %s1041_s25, %s1036_s1 }
  0x57   : > { %p1039_p4 = pnand %p1037_p11, %p1260_p2  ;;  %p1045_p6 = scmp.lt.u32.totalorder %s1036_s1, %s1336_s13 }
  0x58   : > { %p1044_p7 = por %p1043_p5, %p1042_p3 }
  0x59   : > { %p1040_p1 = pneg %p1039_p4 }
  0x5a   : > { %p1046_p9 = por %p1045_p6, %p1044_p7 }
  0x5c   : > { %p1047_p12 = pnand %p1046_p9, %p1040_p1 }
  0x5e   : > { %1050 = shalt.err (!%p1047_p12)
}
  0x5f   : > { %s1051_s8 = scalar_lea.vmem %s1339_s14, 1024  ;;  %s1142_s0 = smov [#allocation7]  }
  0x60   : > { %p1052_p0 = scmp.ne.s32.totalorder %s1339_s14, %s1051_s8  ;;  %s1056_s11 = sshll.u32 %s1142_s0, 4  ;;  %s1057_s11 = int_to_ptr.vmem [resolvable:$false] %s1056_s11 }
  0x61   : > { %s1058_s10 = scalar_lea.vmem %s1057_s11, 2048  ;;  %p1059_p11 = scmp.lt.s32.totalorder %s1339_s14, %s1057_s11 }
  0x62   : > { %p1054_p8 = pnand %p1052_p0, %p1260_p2  ;;  %p1060_p4 = scmp.lt.s32.totalorder %s1058_s10, %s1051_s8 }
  0x64   : > { %p1055_p10 = pneg %p1054_p8  ;;  %p1061_p3 = por %p1060_p4, %p1059_p11 }
  0x66   : > { %p1062_p5 = pnand %p1061_p3, %p1055_p10 }
  0x68   : > { %1065 = shalt.err (!%p1062_p5)
}
  0x69   : > { %928 = dma.hbm_to_vmem [thread:$0]  (!%p1239_p13), %s1336_s13, 1024, %s1339_s14, %s1254_s16, %s1571_s17, %s1571_s17, %s1570_s27  }
  0x6a   : > { %p1572_p2 = scmp.ne.s32.totalorder %s1568_s26, 0 }
  0x6b   : > { %s1369_s23 = sand.u32 (!%p1572_p2), 1, %s1128_s19   ;;  %p1573_p1 = scmp.ne.s32.totalorder (!%p1572_p2), %s1560_s28, 0 }
  0x6c   : > { %259 = sbr.rel (%p1572_p2) target bundleno = 908 (0x38c), region = 40  ;;  %s865_s12 = sshll.u32 (!%p1572_p2), %s1369_s23, 6 }
  0x6d   : > { %s262_s1 = scalar_lea.sflag (!%p1572_p2), [#allocation3], %s1369_s23  ;;  %s1373_s6 = scalar_lea.vmem (!%p1572_p2), [#allocation2], %s865_s12 }
  0x73   : > { %1111 = dma.done.wait (%p1573_p1), %s262_s1, 1024  }
  0x74   : > { %1113 = vsyncadd (%p1573_p1), %s262_s1, 4294966272  ;;  %s270_s9 = sand.u32 1, %s1198_s22   ;;  %s274_s26 = scalar_lea.vmem [#allocation5], %s865_s12 }
  0x75   : > { %s271_s16 = scalar_lea.sflag [#allocation6], %s270_s9 }
  0x76   : > { %1115 = dma.done.wait (%p1573_p1), %s271_s16, 2048  }
  0x77   : > { %1117 = vsyncadd (%p1573_p1), %s271_s16, 4294965248  ;;  %s283_s27 = scalar_lea.vmem [#allocation7], %s865_s12  ;;  %v1388_v2 = vld [vmem:[%s274_s26] sm:$0xff]  ;;  %v1392_v4 = vld [vmem:[%s274_s26 + $0x8] sm:$0xff]  ;;  %v1143_v35 = vmov 0.0|0.0   ;;  %vm1144_vm0 = vmmov 0   ;;  %v417_v46 = vlaneseq }
  0x78   : > { %v1384_v0 = vld [vmem:[%s283_s27] sm:$0xff]  ;;  %v1386_v1 = vld [vmem:[%s283_s27 + $0x8] sm:$0xff]  ;;  %v1394_v5 = vld [vmem:[%s283_s27 + $0x10] sm:$0xff]  ;;  %v349_v7 = vadd.f32 %v1392_v4, %v1388_v2  ;;  %v365_v20 = vmax.f32 %v1388_v2, %v1392_v4  ;;  %905 = vmatprep.subr.bf16.mxu0 %v1143_v35  ;;  %v1145_v39 = vmov 0.0   ;;  %vm428_vm1 = vcmask 130112   ;;  %s868_s10 = sshll.u32 %s1369_s23, 4 }
  0x79   : > { %v381_v3 = vadd.f32 %v1386_v1, %v1384_v0  ;;  %v1396_v6 = vld [vmem:[%s283_s27 + $0x18] sm:$0xff]  ;;  %v1400_v8 = vld [vmem:[%s274_s26 + $0x10] sm:$0xff]  ;;  %v1408_v12 = vld [vmem:[%s283_s27 + $0x20] sm:$0xff]  ;;  %v397_v27 = vmax.f32 %v1384_v0, %v1386_v1  ;;  %897 = vmatprep.mubr.msk.f32.mxu0 %vm1144_vm0, %v1145_v39  ;;  %900 = vmatprep.subr.mxu1 %v1145_v39  ;;  %v418_v49 = vand.u32 127, %v417_v46  ;;  %v1460_v53 = vshrl.u32 %v417_v46, 7  ;;  %s881_s12 = sshll.u32 %s1198_s22, 8 }
  0x7a   : > { %v1402_v9 = vld [vmem:[%s274_s26 + $0x18] sm:$0xff]  ;;  %v384_v10 = vadd.f32 %v1396_v6, %v1394_v5  ;;  %350 = vadd.xlane.f32.xlu0 %v349_v7  ;;  %v1410_v13 = vld [vmem:[%s283_s27 + $0x28] sm:$0xff]  ;;  %v1412_v14 = vld [vmem:[%s274_s26 + $0x20] sm:$0xff]  ;;  %v400_v26 = vmax.f32 %v1394_v5, %v1396_v6  ;;  %902 = vmatprep.mubr.msk.f32.mxu1 %vm1144_vm0, %v1145_v39  ;;  %vm435_vm2 = vcmask 195712   ;;  %vm442_vm3 = vcmask 261312   ;;  %s319_s1 = scalar_lea.vmem [#allocation8], %s868_s10 }
  0x7b   : > { %382 = vadd.xlane.f32.xlu1 %v381_v3  ;;  %v352_v11 = vadd.f32 %v1402_v9, %v1400_v8  ;;  %v1414_v15 = vld [vmem:[%s274_s26 + $0x28] sm:$0xff]  ;;  %v387_v16 = vadd.f32 %v1410_v13, %v1408_v12  ;;  %v1420_v18 = vld [vmem:[%s274_s26 + $0x30] sm:$0xff]  ;;  %v1422_v19 = vld [vmem:[%s274_s26 + $0x38] sm:$0xff]  ;;  %v368_v25 = vmax.f32 %v1400_v8, %v1402_v9  ;;  %v403_v28 = vmax.f32 %v1408_v12, %v1410_v13  ;;  %s739_s9 = sshll.u32 %s319_s1, 4  ;;  %s1500_s26 = scalar_lea.hbm %s1549_s5, %s881_s12  ;;  %s1502_s9 = int_to_ptr.vmem [resolvable:$true] %s739_s9 }
  0x7c   : > { %v355_v17 = vadd.f32 %v1414_v15, %v1412_v14  ;;  %v358_v21 = vadd.f32 %v1422_v19, %v1420_v18  ;;  %v1428_v22 = vld [vmem:[%s283_s27 + $0x30] sm:$0xff]  ;;  %v1430_v23 = vld [vmem:[%s283_s27 + $0x38] sm:$0xff]  ;;  %v371_v29 = vmax.f32 %v1412_v14, %v1414_v15  ;;  %v374_v31 = vmax.f32 %v1420_v18, %v1422_v19  ;;  %v320_v32 = vld [vmem:[%s1547_s3] sm:$0xff]  ;;  %s725_s22 = scalar_lea.sflag [#allocation4], %s1369_s23  ;;  %s1066_s27 = scalar_lea.vmem %s1502_s9, 256 }
  0x7d   : > { %v390_v24 = vadd.f32 %v1430_v23, %v1428_v22  ;;  %v406_v30 = vmax.f32 %v1428_v22, %v1430_v23  ;;  %v321_v33 = vld [vmem:[%s1547_s3 + $0x8] sm:$0xff]  ;;  %v322_v36 = vld [vmem:[%s1547_s3 + $0x10] sm:$0xff]  ;;  %v323_v37 = vld [vmem:[%s1547_s3 + $0x18] sm:$0xff]  ;;  %v423_v52 = vadd.s32 4294967288, %v418_v49  ;;  %v430_v55 = vadd.s32 4294967280, %v418_v49  ;;  %p1067_p13 = scmp.ne.s32.totalorder %s1502_s9, %s1066_s27  ;;  %p1574_p7 = scmp.ne.s32.totalorder %s1561_s29, 0 }
  0x7e   : > { %353 = vadd.xlane.f32.xlu0 %v352_v11  ;;  %v906_v34 = vpack.c.bf16 %v321_v33, %v320_v32  ;;  %v909_v38 = vpack.c.bf16 %v323_v37, %v322_v36  ;;  %v437_v3 = vadd.s32 4294967272, %v418_v49  ;;  %vm469_vm4 = vcmask 1040384   ;;  %s1146_s28 = smov [#allocation8]  }
  0x7f   : > { %385 = vadd.xlane.f32.xlu1 %v384_v10  ;;  %v426_v60 = vsub.s32 %v423_v52, %v1460_v53  ;;  %vm471_vm5 = vcmask 261120   ;;  %vm550_vm6 = vcmask 1041408   ;;  %vm546_vm7 = vcmask 15360   ;;  %p1068_p6 = pnand %p1067_p13, %p1574_p7  ;;  %s1070_s17 = sshll.u32 %s1146_s28, 4  ;;  %s1071_s17 = int_to_ptr.vmem [resolvable:$false] %s1070_s17 }
  0x80   : > { %907 = vmatpush3.bf16.msra.mxu0 %v906_v34  ;;  %s1072_s13 = scalar_lea.vmem %s1071_s17, 512  ;;  %p1073_p12 = scmp.lt.s32.totalorder %s1502_s9, %s1071_s17 }
  0x81   : > { %908 = vmatprep.subr.bf16.mxu0 %v1143_v35  ;;  %p1069_p9 = pneg %p1068_p6  ;;  %p1074_p0 = scmp.lt.s32.totalorder %s1072_s13, %s1066_s27 }
  0x82   : > { %356 = vadd.xlane.f32.xlu0 %v355_v17 }
  0x83   : > { %388 = vadd.xlane.f32.xlu1 %v387_v16  ;;  %v433_v16 = vsub.s32 %v430_v55, %v1460_v53  ;;  %p1075_p8 = por %p1074_p0, %p1073_p12 }
  0x84   : > { %910 = vmatpush3.bf16.msra.mxu0 %v909_v38 }
  0x85   : > { %p1076_p10 = pnand %p1075_p8, %p1069_p9 }
  0x86   : > { %359 = vadd.xlane.f32.xlu0 %v358_v21 }
  0x87   : > { %366 = vmax.xlane.f32.xlu1 %v365_v20  ;;  %v421_v20 = vsub.s32 %v418_v49, %v1460_v53  ;;  %v324_v49 = vld [vmem:[%s1548_s4] sm:$0x3] }
  0x88   : > { %901 = vmatpush3.msk.msra.mxu1 %vm550_vm6, %v324_v49  ;;  %v331_v49 = vld [vmem:[%s1373_s6 + $0x30] sm:$0xff] }
  0x8a   : > { %369 = vmax.xlane.f32.xlu0 %v368_v25 }
  0x8b   : > { %391 = vadd.xlane.f32.xlu1 %v390_v24 }
  0x8e   : > { %398 = vmax.xlane.f32.xlu0 %v397_v27 }
  0x8f   : > { %401 = vmax.xlane.f32.xlu1 %v400_v26 }
  0x92   : > { %372 = vmax.xlane.f32.xlu0 %v371_v29 }
  0x93   : > { %404 = vmax.xlane.f32.xlu1 %v403_v28 }
  0x96   : > { %375 = vmax.xlane.f32.xlu0 %v374_v31 }
  0x97   : > { %407 = vmax.xlane.f32.xlu1 %v406_v30  ;;  %v440_v30 = vsub.s32 %v437_v3, %v1460_v53 }
 0x107   : > { %v351_v41 = vpop.xlane.xlu0 %350 }
 0x108   : > { %v383_v40 = vpop.xlane.xlu1 %382  ;;  %v361_v7 = vmul.f32 0.00390625, %v351_v41 }
 0x109   : > { %v393_v56 = vmul.f32 0.00390625, %v383_v40 }
 0x10b   : > { %v354_v43 = vpop.xlane.xlu0 %353 }
 0x10c   : > { %v386_v42 = vpop.xlane.xlu1 %385  ;;  %v362_v59 = vmul.f32 0.00390625, %v354_v43 }
 0x10d   : > { %v394_v57 = vmul.f32 0.00390625, %v386_v42 }
 0x10f   : > { %v357_v45 = vpop.xlane.xlu0 %356 }
 0x110   : > { %v389_v44 = vpop.xlane.xlu1 %388  ;;  %v363_v10 = vmul.f32 0.00390625, %v357_v45 }
 0x111   : > { %v395_v61 = vmul.f32 0.00390625, %v389_v44 }
 0x113   : > { %v360_v48 = vpop.xlane.xlu0 %359 }
 0x114   : > { %v367_v47 = vpop.xlane.xlu1 %366  ;;  %v364_v31 = vmul.f32 0.00390625, %v360_v48 }
 0x115   : > { %v377_v25 = vadd.f32 %v367_v47, %v361_v7 }
 0x117   : > { %v370_v51 = vpop.xlane.xlu0 %369  ;;  %v422_v38 = vrot.slane %v377_v25, %v421_v20 }
 0x118   : > { %v392_v50 = vpop.xlane.xlu1 %391  ;;  %v378_v11 = vadd.f32 %v370_v51, %v362_v59  ;;  %v632_v59 = vsub.s32 0, %v1460_v53 }
 0x119   : > { %v396_v27 = vmul.f32 0.00390625, %v392_v50 }
 0x11a   : > { %v427_v32 = vrot.slane %v378_v11, %v426_v60 }
 0x11b   : > { %v399_v58 = vpop.xlane.xlu0 %398 }
 0x11c   : > { %v402_v54 = vpop.xlane.xlu1 %401  ;;  %v409_v63 = vadd.f32 %v399_v58, %v393_v56  ;;  %v429_v42 = vsel %vm428_vm1, %v427_v32, %v422_v38 }
 0x11d   : > { %v410_v62 = vadd.f32 %v402_v54, %v394_v57 }
 0x11e   : > { %v452_v29 = vrot.slane %v409_v63, %v421_v20 }
 0x11f   : > { %v373_v24 = vpop.xlane.xlu0 %372  ;;  %v456_v28 = vrot.slane %v410_v62, %v426_v60  ;;  %v651_v62 = vsub.s32 1, %v1460_v53 }
 0x120   : > { %v405_v17 = vpop.xlane.xlu1 %404  ;;  %v379_v26 = vadd.f32 %v373_v24, %v363_v10 }
 0x121   : > { %v411_v21 = vadd.f32 %v405_v17, %v395_v61  ;;  %v457_v40 = vsel %vm428_vm1, %v456_v28, %v452_v29  ;;  %v328_v29 = vld [vmem:[%s1373_s6 + $0x18] sm:$0xff] }
 0x122   : > { %v434_v35 = vrot.slane %v379_v26, %v433_v16 }
 0x123   : > { %v461_v33 = vrot.slane %v411_v21, %v433_v16  ;;  %v376_v37 = vpop.xlane.xlu0 %375 }
 0x124   : > { %v408_v34 = vpop.xlane.xlu1 %407  ;;  %v380_v39 = vadd.f32 %v376_v37, %v364_v31  ;;  %v436_v45 = vsel %vm435_vm2, %v434_v35, %v429_v42  ;;  %v325_v31 = vld [vmem:[%s1373_s6] sm:$0xff]  ;;  %v330_v37 = vld [vmem:[%s1373_s6 + $0x28] sm:$0xff] }
 0x125   : > { %v412_v36 = vadd.f32 %v408_v34, %v396_v27  ;;  %v462_v43 = vsel %vm435_vm2, %v461_v33, %v457_v40 }
 0x126   : > { %v441_v44 = vrot.slane %v380_v39, %v440_v30 }
 0x127   : > { %v466_v41 = vrot.slane %v412_v36, %v440_v30  ;;  %v329_v36 = vld [vmem:[%s1373_s6 + $0x20] sm:$0xff] }
 0x128   : > { %v443_v47 = vsel %vm442_vm3, %v441_v44, %v436_v45 }
 0x129   : > { %v467_v46 = vsel %vm442_vm3, %v466_v41, %v462_v43 }
 0x12a   : > { %v470_v48 = vsel %vm469_vm4, %v443_v47, %v467_v46 }
 0x12b   : > { %898 = vmatmul.mubr.msk.f32.vlgmr.msra.gmra.mrb[0].mxu0 %vm471_vm5, %v470_v48 }
 0x1fe   : > { %v541_v50 = vpop.f32.mrb[0].mxu0 }
 0x1ff   : > { %v545_v51 = vmax.f32 %v541_v50, 0.0  ;;  %v899_v52 = vpop.f32.mrb[1].mxu0  ;;  %v332_v50 = vld [vmem:[%s1373_s6 + $0x38] sm:$0xff] }
 0x201   : > { %903 = vmatmul.mubr.msk.f32.vlgmr.msra.gmra.mrb[0].mxu1 %vm546_vm7, %v545_v51 }
 0x2d4   : > { %v620_v54 = vpop.f32.mrb[0].mxu1 }
 0x2d5   : > { %v872_v55 = vmul.f32 -1.442695, %v620_v54  ;;  %v904_v56 = vpop.f32.mrb[1].mxu1 }
 0x2d7   : > { %972 = vpow2.f32 %v872_v55 }
 0x2e1   : > { %v973_v57 = vpop.eup %972 }
 0x2e2   : > { %v627_v58 = vadd.f32 1.0, %v973_v57 }
 0x2e4   : > { %974 = vrcp.f32 %v627_v58 }
 0x2ee   : > { %v975_v60 = vpop.eup %974 }
 0x2ef   : > { %v633_v61 = vrot.slane %v975_v60, %v632_v59  ;;  %v652_v63 = vrot.slane %v975_v60, %v651_v62 }
 0x2f1   : > { %639 = vbcast.lane.b32.xlu1 %v633_v61, 264  ;;  %635 = vbcast.lane.b32.xlu0 %v633_v61, 256 }
 0x2f5   : > { %654 = vbcast.lane.b32.xlu1 %v652_v63, 256  ;;  %643 = vbcast.lane.b32.xlu0 %v633_v61, 272 }
 0x2f9   : > { %658 = vbcast.lane.b32.xlu1 %v652_v63, 264  ;;  %647 = vbcast.lane.b32.xlu0 %v633_v61, 280 }
 0x2fd   : > { %662 = vbcast.lane.b32.xlu1 %v652_v63, 272 }
 0x301   : > { %666 = vbcast.lane.b32.xlu1 %v652_v63, 280 }
 0x363   : > { %v640_v3 = vpop.permute.xlu1 %639  ;;  %v636_v7 = vpop.permute.xlu0 %635 }
 0x364   : > { %v670_v53 = vmul.f32 %v640_v3, %v1400_v8  ;;  %v671_v17 = vmul.f32 %v640_v3, %v1402_v9  ;;  %v668_v24 = vmul.f32 %v636_v7, %v1388_v2  ;;  %v669_v25 = vmul.f32 %v636_v7, %v1392_v4  ;;  %v326_v9 = vld [vmem:[%s1373_s6 + $0x8] sm:$0xff] }
 0x367   : > { %v655_v10 = vpop.permute.xlu1 %654  ;;  %v644_v20 = vpop.permute.xlu0 %643 }
 0x368   : > { %v676_v11 = vmul.f32 %v655_v10, %v1384_v0  ;;  %v677_v16 = vmul.f32 %v655_v10, %v1386_v1  ;;  %v327_v1 = vld [vmem:[%s1373_s6 + $0x10] sm:$0xff]  ;;  %v672_v33 = vmul.f32 %v644_v20, %v1412_v14  ;;  %v673_v2 = vmul.f32 %v644_v20, %v1414_v15 }
 0x36a   : > { %v684_v28 = vadd.f32 %v676_v11, %v668_v24  ;;  %v685_v0 = vadd.f32 %v677_v16, %v669_v25 }
 0x36b   : > { %v659_v21 = vpop.permute.xlu1 %658  ;;  %v648_v35 = vpop.permute.xlu0 %647 }
 0x36c   : > { %v678_v26 = vmul.f32 %v659_v21, %v1394_v5  ;;  %v679_v27 = vmul.f32 %v659_v21, %v1396_v6  ;;  %v692_v38 = vsub.f32 %v325_v31, %v684_v28  ;;  %v693_v39 = vsub.f32 %v326_v9, %v685_v0 }
 0x36d   : > { %v674_v14 = vmul.f32 %v648_v35, %v1420_v18  ;;  %v675_v15 = vmul.f32 %v648_v35, %v1422_v19 }
 0x36e   : > { %v686_v30 = vadd.f32 %v678_v26, %v670_v53  ;;  %v687_v8 = vadd.f32 %v679_v27, %v671_v17  ;;  %v700_v47 = vmul.f32 %v692_v38, %v692_v38  ;;  %v701_v48 = vmul.f32 %v693_v39, %v693_v39 }
 0x36f   : > { %v663_v32 = vpop.permute.xlu1 %662 }
 0x370   : > { %v680_v4 = vmul.f32 %v663_v32, %v1408_v12  ;;  %v681_v5 = vmul.f32 %v663_v32, %v1410_v13  ;;  %v694_v6 = vsub.f32 %v327_v1, %v686_v30  ;;  %v695_v34 = vsub.f32 %v328_v29, %v687_v8 }
 0x372   : > { %v688_v40 = vadd.f32 %v680_v4, %v672_v33  ;;  %v689_v41 = vadd.f32 %v681_v5, %v673_v2  ;;  %v702_v13 = vmul.f32 %v694_v6, %v694_v6  ;;  %v703_v44 = vmul.f32 %v695_v34, %v695_v34 }
 0x373   : > { %v667_v42 = vpop.permute.xlu1 %666 }
 0x374   : > { %v696_v12 = vsub.f32 %v329_v36, %v688_v40  ;;  %v697_v43 = vsub.f32 %v330_v37, %v689_v41  ;;  %v682_v45 = vmul.f32 %v667_v42, %v1428_v22  ;;  %v683_v46 = vmul.f32 %v667_v42, %v1430_v23 }
 0x375   : > { %v716_v55 = vadd.f32 %v702_v13, %v700_v47  ;;  %v717_v19 = vadd.f32 %v703_v44, %v701_v48 }
 0x376   : > { %v704_v51 = vmul.f32 %v696_v12, %v696_v12  ;;  %v705_v52 = vmul.f32 %v697_v43, %v697_v43  ;;  %v690_v54 = vadd.f32 %v682_v45, %v674_v14  ;;  %v691_v18 = vadd.f32 %v683_v46, %v675_v15 }
 0x378   : > { %v698_v56 = vsub.f32 %v331_v49, %v690_v54  ;;  %v699_v57 = vsub.f32 %v332_v50, %v691_v18  ;;  %v718_v22 = vadd.f32 %v716_v55, %v704_v51  ;;  %v719_v58 = vadd.f32 %v717_v19, %v705_v52 }
 0x37a   : > { %v706_v23 = vmul.f32 %v698_v56, %v698_v56  ;;  %v707_v59 = vmul.f32 %v699_v57, %v699_v57 }
 0x37c   : > { %v720_v60 = vadd.f32 %v718_v22, %v706_v23  ;;  %v721_v61 = vadd.f32 %v719_v58, %v707_v59 }
 0x37e   : > { %722 = vst [vmem:[%s319_s1] sm:$0xff] %v720_v60  ;;  %723 = vst [vmem:[%s319_s1 + $0x8] sm:$0xff] %v721_v61 }
 0x37f   : > { %1079 = shalt.err (!%p1076_p10)
}
 0x380   : > { %s1080_s23 = scalar_lea.hbm %s1500_s26, 256  ;;  %s1084_s15 = scalar_lea.hbm %s1549_s5, 512 }
 0x381   : > { %p1081_p11 = scmp.ne.s32.totalorder %s1500_s26, %s1080_s23  ;;  %p1085_p5 = scmp.lt.u32.totalorder %s1500_s26, %s1549_s5 }
 0x382   : > { %p1086_p2 = scmp.lt.u32.totalorder %s1084_s15, %s1080_s23  ;;  %p1088_p13 = scmp.lt.u32.totalorder %s1080_s23, %s1500_s26 }
 0x383   : > { %p1082_p4 = pnand %p1081_p11, %p1574_p7 }
 0x384   : > { %p1087_p1 = por %p1086_p2, %p1085_p5 }
 0x385   : > { %p1083_p3 = pneg %p1082_p4 }
 0x386   : > { %p1089_p6 = por %p1088_p13, %p1087_p1 }
 0x388   : > { %p1090_p9 = pnand %p1089_p6, %p1083_p3 }
 0x38a   : > { %1093 = shalt.err (!%p1090_p9)
}
 0x38b   : > { %917 = dma.vmem_to_hbm [thread:$0]  (%p1574_p7), %s1502_s9, 256, %s1500_s26, %s725_s22  }
 0x38c PF: > { %s751_s0 = sand.u32 1, %s1124_s18   ;;  %p1575_p12 = scmp.ne.s32.totalorder %s1562_s30, 0 }
 0x38d   : > { %p1576_p0 = scmp.ge.s32.totalorder %s1136_s21, 2  ;;  %s752_s11 = scalar_lea.sflag [#allocation4], %s751_s0 }
 0x38f   : > { %p930_p8 = pnand %p1576_p0, %p1575_p12 }
 0x391   : > { %1119 = dma.done.wait (!%p930_p8), %s752_s11, 256  }
 0x392   : > { %1121 = vsyncadd (!%p930_p8), %s752_s11, 4294967040  ;;  %s1577_s10 = sld [smem:[#allocation12_spill]]  ;;  %p21_p10 = scmp.ge.s32.totalorder %s1202_s24, 4  }
 0x393   : > { %s1578_s18 = smov %s1128_s19  ;;  %s1579_s19 = smov %s1132_s20 }
 0x394   : > { %s1581_s21 = smov %s1202_s24  ;;  %23 = sbr.rel (!%p21_p10) target bundleno = 10 (0xa), region = 109 }
 0x398   : > { %s1580_s20 = smov %s1577_s10 }
 0x39b   :  { %757 = vsyncpa [#allocation3], 1 }
 0x39c   :  { %759 = vsyncpa [#allocation3 + $0x1], 1 }
 0x39d   :  { %760 = vsyncpa [#allocation6], 1 }
 0x39e   :  { %762 = vsyncpa [#allocation6 + $0x1], 1 }
 0x39f   :  { %763 = vsyncpa [#allocation4], 1 }
 0x3a0   :  { %765 = vsyncpa [#allocation4 + $0x1], 1 }

</bundles_post_ra>
